<compile_context>
chip_gen: v6e
topology: v6e:2x2x1
jax: 0.10.0
libtpu: 0.0.40
codegen_flags: <defaults>
</compile_context>

<pallas_src>
import functools

import jax
import jax.numpy as jnp
from jax.experimental import pallas as pl
from jax.experimental.pallas import tpu as pltpu


def _round_up(x, m):
    return ((x + m - 1) // m) * m


def _icnet_kernel(n_layers, *refs):
    """refs = (z_ref, W_0, b_0, ..., W_{L-1}, b_{L-1}, out_ref).

    z_ref : (1, TM)            lane-dense tile of flattened input scalars
    W_i   : (odim_i, idim_i)   layer weights (W_0 has idim == 1)
    b_i   : (odim_i, 1)        biases, column vectors for broadcasting
    out   : (out_dim, TM)      lane-dense output tile
    """
    z_ref = refs[0]
    out_ref = refs[-1]
    params = refs[1:-1]

    z = z_ref[...]                      # (1, TM) f32
    # First layer: idim == 1 -> pure VPU broadcast multiply-add, no MXU.
    w0 = params[0][...]                 # (h0, 1)
    b0 = params[1][...]                 # (h0, 1)
    h = w0 * z + b0                     # (h0, TM)
    if n_layers > 1:
        h = jnp.minimum(h, 0.0)         # activ(x) = min(0, x)

    for i in range(1, n_layers):
        w = params[2 * i][...]          # (odim, idim)
        b = params[2 * i + 1][...]      # (odim, 1)
        h = jnp.dot(w, h, preferred_element_type=jnp.float32) + b
        if i < n_layers - 1:
            h = jnp.minimum(h, 0.0)

    out_ref[...] = h.astype(out_ref.dtype)


def increasing_concave_net_forward(z, Ws, bs, scale=None, tile_m=1024):
    """JAX/Pallas equivalent of IncreasingConcaveNet.forward.

    z:  array of shape (..., N); semantics match torch.unsqueeze(z, -1)
        followed by the dense chain.
    Ws: list of (odim, idim) weight matrices, Ws[0] has idim == 1.
    bs: list of (odim,) bias vectors.
    Returns array of shape (*z.shape, out_dim).
    """
    orig_shape = z.shape
    m = 1
    for d in orig_shape:
        m *= int(d)

    n_layers = len(Ws)
    out_dim = int(Ws[-1].shape[0])

    # Fold the final scale into the last layer (removes an in-kernel VPU mul).
    Ws = [jnp.asarray(W, jnp.float32) for W in Ws]
    bs = [jnp.asarray(b, jnp.float32) for b in bs]
    if scale is not None:
        Ws[-1] = Ws[-1] * jnp.float32(scale)
        bs[-1] = bs[-1] * jnp.float32(scale)

    # Lane-dense layout: flattened scalars along the last (lane) axis.
    m_aligned = _round_up(max(m, 1), 128)
    tm = min(int(tile_m), m_aligned)          # multiple of 128 by construction
    m_pad = _round_up(m, tm)
    grid_m = m_pad // tm

    zf = z.reshape(1, m).astype(jnp.float32)
    if m_pad != m:
        zf = jnp.pad(zf, ((0, 0), (0, m_pad - m)))

    args = [zf]
    in_specs = [pl.BlockSpec((1, tm), lambda i: (0, i))]
    for W, b in zip(Ws, bs):
        bcol = b.reshape(-1, 1)                       # (odim, 1)
        args.append(W)
        in_specs.append(pl.BlockSpec(W.shape, lambda i: (0, 0)))   # resident
        args.append(bcol)
        in_specs.append(pl.BlockSpec(bcol.shape, lambda i: (0, 0)))  # resident

    kernel = functools.partial(_icnet_kernel, n_layers)

    out = pl.pallas_call(
        kernel,
        out_shape=jax.ShapeDtypeStruct((out_dim, m_pad), jnp.float32),
        grid=(grid_m,),
        in_specs=in_specs,
        out_specs=pl.BlockSpec((out_dim, tm), lambda i: (0, i)),
        compiler_params=pltpu.CompilerParams(
            dimension_semantics=("parallel",)),
    )(*args)

    # (out_dim, m_pad) -> (m, out_dim) -> (*z.shape, out_dim)
    out = out[:, :m].T
    return out.reshape(*orig_shape, out_dim)


def _reference_forward(z, Ws, bs, scale=None):
    """Pure-JAX reference mirroring the PyTorch forward."""
    z = z[..., None]
    for W, b in list(zip(Ws, bs))[:-1]:
        h = z @ W.T + b
        z = jnp.minimum(jnp.zeros_like(h), h)
    W, b = Ws[-1], bs[-1]
    z = z @ W.T + b
    if scale is not None:
        z = z * scale
    return z


if __name__ == "__main__":
    # Module config: layers = [1, 32, 32, 1], scale = 2.0
    layers = [1, 32, 32, 1]
    scale = 2.0

    key = jax.random.PRNGKey(0)
    keys = jax.random.split(key, 2 * (len(layers) - 1) + 2)

    # Deterministic parameter init: normal(0, 1e-6), shapes (odim, idim) / (odim,)
    Ws, bs = [], []
    for i, (odim, idim) in enumerate(zip(layers[1:], layers)):
        Ws.append(1e-6 * jax.random.normal(keys[2 * i], (odim, idim), jnp.float32))
        bs.append(1e-6 * jax.random.normal(keys[2 * i + 1], (odim,), jnp.float32))

    # Small example input: batch=2, seq=8 scalars each (single-tile path).
    x_small = jax.random.normal(keys[-2], (2, 8), jnp.float32)
    out_small = jax.block_until_ready(
        increasing_concave_net_forward(x_small, Ws, bs, scale=scale))
    ref_small = _reference_forward(x_small, Ws, bs, scale=scale)
    assert out_small.shape == ref_small.shape == (2, 8, 1), (
        out_small.shape, ref_small.shape)
    assert jnp.allclose(out_small, ref_small, atol=1e-6, rtol=1e-5), \
        "mismatch vs reference (small)"

    # Slightly larger input to exercise the multi-tile grid + padding path.
    x_big = jax.random.normal(keys[-1], (3, 700), jnp.float32)
    out_big = jax.block_until_ready(
        increasing_concave_net_forward(x_big, Ws, bs, scale=scale))
    ref_big = _reference_forward(x_big, Ws, bs, scale=scale)
    assert out_big.shape == ref_big.shape == (3, 700, 1), (
        out_big.shape, ref_big.shape)
    assert jnp.allclose(out_big, ref_big, atol=1e-6, rtol=1e-5), \
        "mismatch vs reference (multi-tile)"

    print("KERNEL_OK")
</pallas_src>

<mosaic_0001>
module attributes {stable_mosaic.version = 11 : i64} {
  func.func @_icnet_kernel(%arg0: i32, %arg1: memref<1x128xf32, #tpu.memory_space<vmem>>, %arg2: memref<32x1xf32, #tpu.memory_space<vmem>>, %arg3: memref<32x1xf32, #tpu.memory_space<vmem>>, %arg4: memref<32x32xf32, #tpu.memory_space<vmem>>, %arg5: memref<32x1xf32, #tpu.memory_space<vmem>>, %arg6: memref<1x32xf32, #tpu.memory_space<vmem>>, %arg7: memref<1x1xf32, #tpu.memory_space<vmem>>, %arg8: memref<1x128xf32, #tpu.memory_space<vmem>>) attributes {dimension_semantics = [#tpu.dimension_semantics<parallel>], iteration_bounds = array<i64: 1>, scalar_prefetch = 0 : i64, scratch_operands = 0 : i64, tpu.core_type = #tpu.core_type<tc>, window_params = [{transform_indices = @transform_0, window_bounds = array<i64: 1, 128>}, {pipeline_mode = #tpu.pipeline_mode<synchronous>, transform_indices = @transform_1, window_bounds = array<i64: 32, 1>}, {pipeline_mode = #tpu.pipeline_mode<synchronous>, transform_indices = @transform_2, window_bounds = array<i64: 32, 1>}, {pipeline_mode = #tpu.pipeline_mode<synchronous>, transform_indices = @transform_3, window_bounds = array<i64: 32, 32>}, {pipeline_mode = #tpu.pipeline_mode<synchronous>, transform_indices = @transform_4, window_bounds = array<i64: 32, 1>}, {pipeline_mode = #tpu.pipeline_mode<synchronous>, transform_indices = @transform_5, window_bounds = array<i64: 1, 32>}, {pipeline_mode = #tpu.pipeline_mode<synchronous>, transform_indices = @transform_6, window_bounds = array<i64: 1, 1>}, {transform_indices = @transform_7, window_bounds = array<i64: 1, 128>}]} {
    %c0 = arith.constant 0 : index
    %c0_0 = arith.constant 0 : index
    %0 = vector.load %arg1[%c0, %c0_0] : memref<1x128xf32, #tpu.memory_space<vmem>>, vector<1x128xf32>
    %c0_1 = arith.constant 0 : index
    %c0_2 = arith.constant 0 : index
    %1 = vector.load %arg2[%c0_1, %c0_2] : memref<32x1xf32, #tpu.memory_space<vmem>>, vector<32x1xf32>
    %c0_3 = arith.constant 0 : index
    %c0_4 = arith.constant 0 : index
    %2 = vector.load %arg3[%c0_3, %c0_4] : memref<32x1xf32, #tpu.memory_space<vmem>>, vector<32x1xf32>
    %3 = vector.broadcast %1 : vector<32x1xf32> to vector<32x128xf32>
    %4 = vector.broadcast %0 : vector<1x128xf32> to vector<32x128xf32>
    %5 = arith.mulf %3, %4 : vector<32x128xf32>
    %6 = vector.broadcast %2 : vector<32x1xf32> to vector<32x128xf32>
    %7 = arith.addf %5, %6 : vector<32x128xf32>
    %cst = arith.constant 0.000000e+00 : f32
    %8 = vector.broadcast %cst : f32 to vector<32x128xf32>
    %9 = arith.minimumf %7, %8 : vector<32x128xf32>
    %c0_5 = arith.constant 0 : index
    %c0_6 = arith.constant 0 : index
    %10 = vector.load %arg4[%c0_5, %c0_6] : memref<32x32xf32, #tpu.memory_space<vmem>>, vector<32x32xf32>
    %c0_7 = arith.constant 0 : index
    %c0_8 = arith.constant 0 : index
    %11 = vector.load %arg5[%c0_7, %c0_8] : memref<32x1xf32, #tpu.memory_space<vmem>>, vector<32x1xf32>
    %cst_9 = arith.constant dense<0.000000e+00> : vector<32x128xf32>
    %12 = tpu.matmul %10, %9, %cst_9 {dimension_numbers = #tpu.dot_dimension_numbers<[1], [0], [0], [1], [0, 0, 1, 1], [], []>} : vector<32x32xf32>, vector<32x128xf32>, vector<32x128xf32> -> vector<32x128xf32>
    %13 = vector.broadcast %11 : vector<32x1xf32> to vector<32x128xf32>
    %14 = arith.addf %12, %13 : vector<32x128xf32>
    %cst_10 = arith.constant 0.000000e+00 : f32
    %15 = vector.broadcast %cst_10 : f32 to vector<32x128xf32>
    %16 = arith.minimumf %14, %15 : vector<32x128xf32>
    %c0_11 = arith.constant 0 : index
    %c0_12 = arith.constant 0 : index
    %17 = vector.load %arg6[%c0_11, %c0_12] : memref<1x32xf32, #tpu.memory_space<vmem>>, vector<1x32xf32>
    %c0_13 = arith.constant 0 : index
    %c0_14 = arith.constant 0 : index
    %18 = vector.load %arg7[%c0_13, %c0_14] : memref<1x1xf32, #tpu.memory_space<vmem>>, vector<1x1xf32>
    %cst_15 = arith.constant dense<0.000000e+00> : vector<1x128xf32>
    %19 = tpu.matmul %17, %16, %cst_15 {dimension_numbers = #tpu.dot_dimension_numbers<[1], [0], [0], [1], [0, 0, 1, 1], [], []>} : vector<1x32xf32>, vector<32x128xf32>, vector<1x128xf32> -> vector<1x128xf32>
    %20 = vector.broadcast %18 : vector<1x1xf32> to vector<1x128xf32>
    %21 = arith.addf %19, %20 : vector<1x128xf32>
    %c0_16 = arith.constant 0 : index
    %c0_17 = arith.constant 0 : index
    %22 = vector.load %arg8[%c0_16, %c0_17] : memref<1x128xf32, #tpu.memory_space<vmem>>, vector<1x128xf32>
    tpu.vector_store %arg8[%c0_16, %c0_17], %21 {strides = array<i32>} : memref<1x128xf32, #tpu.memory_space<vmem>>, vector<1x128xf32>,
    return
  }
  func.func @transform_0(%arg0: i32) -> (i32, i32) {
    %c0_i32 = arith.constant 0 : i32
    %c0_i32_0 = arith.constant 0 : i32
    return %c0_i32, %arg0 : i32, i32
  }
  func.func @transform_1(%arg0: i32) -> (i32, i32) {
    %c0_i32 = arith.constant 0 : i32
    %c0_i32_0 = arith.constant 0 : i32
    %c0_i32_1 = arith.constant 0 : i32
    return %c0_i32, %c0_i32_0 : i32, i32
  }
  func.func @transform_2(%arg0: i32) -> (i32, i32) {
    %c0_i32 = arith.constant 0 : i32
    %c0_i32_0 = arith.constant 0 : i32
    %c0_i32_1 = arith.constant 0 : i32
    return %c0_i32, %c0_i32_0 : i32, i32
  }
  func.func @transform_3(%arg0: i32) -> (i32, i32) {
    %c0_i32 = arith.constant 0 : i32
    %c0_i32_0 = arith.constant 0 : i32
    %c0_i32_1 = arith.constant 0 : i32
    return %c0_i32, %c0_i32_0 : i32, i32
  }
  func.func @transform_4(%arg0: i32) -> (i32, i32) {
    %c0_i32 = arith.constant 0 : i32
    %c0_i32_0 = arith.constant 0 : i32
    %c0_i32_1 = arith.constant 0 : i32
    return %c0_i32, %c0_i32_0 : i32, i32
  }
  func.func @transform_5(%arg0: i32) -> (i32, i32) {
    %c0_i32 = arith.constant 0 : i32
    %c0_i32_0 = arith.constant 0 : i32
    %c0_i32_1 = arith.constant 0 : i32
    return %c0_i32, %c0_i32_0 : i32, i32
  }
  func.func @transform_6(%arg0: i32) -> (i32, i32) {
    %c0_i32 = arith.constant 0 : i32
    %c0_i32_0 = arith.constant 0 : i32
    %c0_i32_1 = arith.constant 0 : i32
    return %c0_i32, %c0_i32_0 : i32, i32
  }
  func.func @transform_7(%arg0: i32) -> (i32, i32) {
    %c0_i32 = arith.constant 0 : i32
    %c0_i32_0 = arith.constant 0 : i32
    return %c0_i32, %arg0 : i32, i32
  }
}

</mosaic_0001>

<bundles_post_ra>
// kernel: tpu_custom_call.1
= control target key start
LH: loop header
LB: loop body
LE: loop exit
PB: predicated region body
PF: predicated region fallthrough
CT: control target
= control target key end

     0   :  { %s506_s0 = inlined_call_operand.vmem [shape: f32[1,128], index: 0, kind: input, shape index: {}]   ;;  %s507_s1 = inlined_call_operand.vmem [shape: f32[32,1], index: 1, kind: input, shape index: {}]   ;;  %s508_s2 = inlined_call_operand.vmem [shape: f32[32,1], index: 2, kind: input, shape index: {}]   ;;  %s509_s3 = inlined_call_operand.vmem [shape: f32[32,32], index: 3, kind: input, shape index: {}]   ;;  %s510_s4 = inlined_call_operand.vmem [shape: f32[32,1], index: 4, kind: input, shape index: {}]   ;;  %s511_s5 = inlined_call_operand.vmem [shape: f32[1,32], index: 5, kind: input, shape index: {}]   ;;  %s512_s6 = inlined_call_operand.<no memory space> [shape: f32[1,1], index: 6, kind: input, shape index: {}]   ;;  %s513_s7 = inlined_call_operand.hbm [shape: f32[1,128], index: 7, kind: output, shape index: {}]  }
   0x1   :  { %v12_v0 = vstv %s512_s6 }
   0x2   :  { %13 = vst [vmem:[#allocation2] sm:$0x1] %v12_v0 }
   0x3   :  { %v37_v1 = vld [vmem:[%s508_s2 + $0x18] sm:$0xff]  ;;  %v397_v3 = vmov 0   ;;  %v32_v4 = vld [vmem:[%s507_s1 + $0x10] sm:$0xff]  ;;  %v31_v5 = vld [vmem:[%s507_s1 + $0x8] sm:$0xff] }
   0x4   :  { %v33_v2 = vld [vmem:[%s507_s1 + $0x18] sm:$0xff]  ;;  %374 = vset.pattern.permute.xlu1 %v397_v3  ;;  %373 = vset.pattern.permute.xlu0 %v397_v3 }
   0x5   :  { %85 = vperm.xlu1 %374, %v37_v1   ;;  %55 = vperm.xlu0 %373, %v33_v2  }
   0x6   :  { %14 = vsyncpa [#allocation4], 0  ;;  %v36_v6 = vld [vmem:[%s508_s2 + $0x10] sm:$0xff]  ;;  %v30_v7 = vld [vmem:[%s507_s1] sm:$0xff]  ;;  %vm124_vm0 = vcmask 261120   ;;  %v398_v40 = vmov 0.0   ;;  %v233_v58 = vlaneseq }
   0x7   :  { %v35_v8 = vld [vmem:[%s508_s2 + $0x8] sm:$0xff]  ;;  %v34_v9 = vld [vmem:[%s508_s2] sm:$0xff]  ;;  %v103_v10 = vld [vmem:[%s510_s4 + $0x18] sm:$0xff]  ;;  %358 = vmatprep.subr.mxu1 %v398_v40  ;;  %vm399_vm1 = vmmov 0   ;;  %s400_s6 = smov [#allocation3]  }
   0x8   :  { %v102_v11 = vld [vmem:[%s510_s4 + $0x10] sm:$0xff]  ;;  %v96_v12 = vld [vmem:[%s509_s3] sm:$0xff]  ;;  %v101_v13 = vld [vmem:[%s510_s4 + $0x8] sm:$0xff]  ;;  %366 = vmatprep.mubr.msk.f32.mxu1 %vm399_vm1, %v398_v40  ;;  %v234_v59 = vshrl.u32 %v233_v58, 7  ;;  %s317_s10 = sshll.u32 %s400_s6, 4  ;;  %s318_s10 = int_to_ptr.vmem [resolvable:$true] %s317_s10 }
   0x9   :  { %50 = vperm.xlu0 %373, %v32_v4   ;;  %45 = vperm.xlu1 %374, %v31_v5   ;;  %v100_v14 = vld [vmem:[%s510_s4] sm:$0xff]  ;;  %v97_v37 = vld [vmem:[%s509_s3 + $0x8] sm:$0xff]  ;;  %v98_v38 = vld [vmem:[%s509_s3 + $0x10] sm:$0xff]  ;;  %s375_s11 = scalar_lea.vmem %s318_s10, 16  ;;  %s379_s12 = scalar_lea.vmem %s318_s10, 32 }
   0xa   :  { %352 = vmatprep.mubr.msk.f32.mxu0 %vm124_vm0, %v96_v12  ;;  %v227_v15 = vld [vmem:[#allocation2] sm:$0x1]  ;;  %v99_v39 = vld [vmem:[%s509_s3 + $0x18] sm:$0xff]  ;;  %v235_v60 = vsub.s32 0, %v234_v59  ;;  %p376_p0 = scmp.ne.s32.totalorder %s318_s10, %s375_s11  ;;  %p380_p1 = scmp.lt.s32.totalorder %s318_s10, %s318_s10 }
   0xb   :  { %v325_v16 = vld [vmem:[%s506_s0] ss:$0 sm:$0xff]  ;;  %p381_p2 = scmp.lt.s32.totalorder %s379_s12, %s375_s11 }
   0xc   :  { %v226_v57 = vld [vmem:[%s511_s5] sm:$0x1] }
   0xd   :  { %80 = vperm.xlu0 %373, %v36_v6   ;;  %40 = vperm.xlu1 %374, %v30_v7   ;;  %p382_p3 = por %p381_p2, %p380_p1 }
   0xf   :  { %p383_p4 = pnand %p382_p3, %p376_p0 }
  0x11   :  { %75 = vperm.xlu0 %373, %v35_v8   ;;  %70 = vperm.xlu1 %374, %v34_v9  }
  0x15   :  { %121 = vperm.xlu0 %373, %v103_v10   ;;  %116 = vperm.xlu1 %374, %v102_v11  }
  0x19   :  { %111 = vperm.xlu0 %373, %v101_v13   ;;  %106 = vperm.xlu1 %374, %v100_v14  }
  0x1d   :  { %230 = vperm.xlu0 %373, %v227_v15  }
  0x80   :  { %v86_v17 = vpop.permute.xlu1 %85  ;;  %v56_v18 = vpop.permute.xlu0 %55 }
  0x81   :  { %v67_v19 = vmul.f32 %v325_v16, %v56_v18 }
  0x83   :  { %v91_v20 = vadd.f32 %v86_v17, %v67_v19 }
  0x84   :  { %v51_v21 = vpop.permute.xlu0 %50  ;;  %v46_v22 = vpop.permute.xlu1 %45 }
  0x85   :  { %v95_v23 = vmin.f32 %v91_v20, 0.0  ;;  %v66_v24 = vmul.f32 %v325_v16, %v51_v21  ;;  %v65_v28 = vmul.f32 %v325_v16, %v46_v22 }
  0x87   :  { %344 = vmatprep.subr.mxu0 %v95_v23 }
  0x88   :  { %v81_v25 = vpop.permute.xlu0 %80  ;;  %v41_v26 = vpop.permute.xlu1 %40  ;;  %345 = vmatpush3.msra.mxu0 %v95_v23 }
  0x89   :  { %v90_v27 = vadd.f32 %v81_v25, %v66_v24  ;;  %v64_v30 = vmul.f32 %v325_v16, %v41_v26 }
  0x8b   :  { %v94_v29 = vmin.f32 %v90_v27, 0.0 }
  0x8c   :  { %v76_v31 = vpop.permute.xlu0 %75  ;;  %v71_v32 = vpop.permute.xlu1 %70 }
  0x8d   :  { %v89_v33 = vadd.f32 %v76_v31, %v65_v28  ;;  %v88_v34 = vadd.f32 %v71_v32, %v64_v30  ;;  %346 = vmatprep.subr.mxu0 %v94_v29 }
  0x8e   :  { %347 = vmatpush3.msra.mxu0 %v94_v29 }
  0x8f   :  { %v93_v35 = vmin.f32 %v89_v33, 0.0  ;;  %v92_v36 = vmin.f32 %v88_v34, 0.0 }
  0x90   :  { %v122_v41 = vpop.permute.xlu0 %121  ;;  %v117_v43 = vpop.permute.xlu1 %116 }
  0x91   :  { %348 = vmatprep.subr.mxu0 %v93_v35 }
  0x92   :  { %349 = vmatpush3.msra.mxu0 %v93_v35 }
  0x93   :  { %350 = vmatprep.subr.mxu0 %v92_v36 }
  0x94   :  { %351 = vmatpush3.msra.mxu0 %v92_v36  ;;  %v112_v47 = vpop.permute.xlu0 %111  ;;  %v107_v52 = vpop.permute.xlu1 %106 }
  0x95   :  { %353 = vmatmul.mubr.msk.f32.vlgmr.msra.gmra.mxu0 %vm124_vm0, %v97_v37 }
  0x96   :  { %355 = vmatprep.mubr.msk.f32.mxu0 %vm124_vm0, %v98_v38 }
  0x98   :  { %v231_v61 = vpop.permute.xlu0 %230 }
  0x99   :  { %356 = vmatmul.mubr.msk.f32.gmra.mxu0 %vm124_vm0, %v99_v39  ;;  %v236_v62 = vrot.slane %v231_v61, %v235_v60 }
 0x155   :  { %v354_v42 = vpop.f32.mrf.mxu0 }
 0x156   :  { %v209_v49 = vadd.f32 %v354_v42, %v112_v47 }
 0x157   :  { %v203_v44 = vpop.f32.mrf.mxu0 }
 0x158   :  { %v204_v53 = vadd.f32 %v203_v44, %v107_v52  ;;  %v223_v55 = vmin.f32 %v209_v49, 0.0 }
 0x159   :  { %v357_v45 = vpop.f32.mrf.mxu0 }
 0x15a   :  { %v219_v46 = vadd.f32 %v357_v45, %v122_v41  ;;  %v222_v56 = vmin.f32 %v204_v53, 0.0 }
 0x15b   :  { %v213_v48 = vpop.f32.mrf.mxu0 }
 0x15c   :  { %v225_v50 = vmin.f32 %v219_v46, 0.0  ;;  %v214_v51 = vadd.f32 %v213_v48, %v117_v43 }
 0x15e   :  { %v224_v54 = vmin.f32 %v214_v51, 0.0  ;;  %359 = vmatpush3.msra.mxu1 %v225_v50 }
 0x15f   :  { %360 = vmatprep.subr.mxu1 %v398_v40 }
 0x160   :  { %361 = vmatpush3.msra.mxu1 %v224_v54 }
 0x161   :  { %362 = vmatprep.subr.mxu1 %v398_v40 }
 0x162   :  { %363 = vmatpush3.msra.mxu1 %v223_v55 }
 0x163   :  { %364 = vmatprep.subr.mxu1 %v398_v40 }
 0x164   :  { %365 = vmatpush3.msra.mxu1 %v222_v56 }
 0x165   :  { %367 = vmatmul.mubr.msk.f32.vlgmr.msra.gmra.mxu1 %vm124_vm0, %v226_v57 }
 0x225   :  { %v306_v63 = vpop.f32.mrf.mxu1 }
 0x226   :  { %v307_v0 = vadd.f32 %v306_v63, %v236_v62 }
 0x227   :  { %v368_v1 = vpop.f32.mrf.mxu1 }
 0x228   :  { %310 = vst [vmem:[#allocation3] sm:$0x1] %v307_v0 }
 0x229   :  { %386 = shalt.err (!%p383_p4)
}
 0x22a   :  { %320 = dma.vmem_to_hbm [thread:$0]  %s318_s10, 16, %s513_s7, [#allocation4]  }
 0x22b   :  { %395 = dma.done.wait [#allocation4], 16  }
 0x22c   :  { %396 = vsyncadd [#allocation4], 4294967280 }
 0x22d   :  { %324 = vsyncpa [#allocation4], 1 }

</bundles_post_ra>
